<compile_context>
chip_gen: v7x
topology: tpu7x:2x2x1
jax: 0.10.0
libtpu: 0.0.40
codegen_flags: <defaults>
</compile_context>

<pallas_src>
import math

import jax
import jax.numpy as jnp
from jax.experimental import pallas as pl
from jax.experimental.pallas import tpu as pltpu


def _copy_rows_kernel(x_ref, o_ref):
    # The input BlockSpec already fetched exactly the sampled rows (the stride
    # lives in the HBM DMA), so this is a straight VMEM copy.
    o_ref[...] = x_ref[...]


def _select_first_kernel(x_ref, o_ref):
    # Fallback path: x_ref is (tb, span, D); keep the first row of each group.
    o_ref[...] = x_ref[:, 0, :]


def _vmem_capacity_bytes() -> int:
    try:
        cap = int(getattr(pltpu.get_tpu_info(), "vmem_capacity_bytes", 0))
        if cap > 0:
            return cap
    except Exception:
        pass
    try:
        kind = jax.devices()[0].device_kind.lower()
    except Exception:
        kind = ""
    # v7x: 64 MiB per TensorCore; v5e / v6e: 128 MiB.
    return (64 if "7" in kind else 128) * 1024 * 1024


def _choose_tb(n_rows: int, in_row_bytes: int, out_row_bytes: int,
               sub: int, block_rows) -> int:
    """Output rows copied per grid step."""
    # Modest blocks: ~2 MiB out / ~4 MiB in, at most 1024 rows (roofline
    # plateaus around 512-1024-row tiles; giant blocks only serialize the
    # pipeline).
    tb = min(1024,
             max(1, (2 << 20) // max(out_row_bytes, 1)),
             max(1, (4 << 20) // max(in_row_bytes, 1)))
    # Guarantee >= ~4 grid steps (>= 2 per TensorCore on v7x) when there is
    # enough work, so DMA-in / copy / DMA-out actually overlap.
    min_blocks = 4
    if n_rows >= min_blocks * sub:
        tb = min(tb, -(-n_rows // min_blocks))
    if block_rows is not None:
        tb = min(tb, int(block_rows))
    tb = min(tb, n_rows)
    if tb < n_rows:
        # Dtype-aware sublane alignment -> full unmasked vector loads/stores.
        tb = max(sub, (tb // sub) * sub)
        tb = min(tb, n_rows)
    return max(int(tb), 1)


def sampling(x: jax.Array, span: int, *, block_rows=None) -> jax.Array:
    """Equivalent of `x[::span]` along axis 0, as a Pallas TPU kernel.

    x: [T, *feature_dims]  (e.g. [T, C, H, W] event tensor)
    returns: [ceil(T/span), *feature_dims]
    block_rows: optional cap on output rows copied per grid step (testing/tuning).
    """
    assert span >= 1, "sampling span must be >= 1"
    T = x.shape[0]
    feat = x.shape[1:]
    D = int(math.prod(feat)) if feat else 1

    # Fast / degenerate paths: no data movement worth a kernel.
    if span == 1 or T == 0:
        return x
    if T <= span:
        return x[:1]

    itemsize = jnp.dtype(x.dtype).itemsize
    sub = {1: 32, 2: 16}.get(itemsize, 8)     # sublane alignment per dtype

    n_full = T // span                        # output rows produced by the kernel
    T_main = n_full * span                    # input rows covered by full groups
    has_tail = (T % span) != 0                # one extra sampled row at T_main
    T_out = n_full + (1 if has_tail else 0)

    # Lane-dense 2-D view: last dim D maps onto the 128-wide lane axis.
    x2 = x.reshape(T, D)

    use_strided_dma = (D % 128 == 0)
    if use_strided_dma:
        # (n_full, span*D) view: columns [0:D) of row i are exactly row i*span
        # of the original tensor, so the BlockSpec DMA only touches sampled rows.
        xg = x2[:T_main].reshape(n_full, span * D)
        in_row_bytes = D * itemsize
        kernel = _copy_rows_kernel

        def make_in_spec(tb):
            return pl.BlockSpec((tb, D), lambda i: (i, 0))
    else:
        # Full-read fallback for feature widths not divisible by 128 (tiny D):
        # (n_full, span, D) view, keep the first row of each span-group.
        xg = x2[:T_main].reshape(n_full, span, D)
        in_row_bytes = span * D * itemsize
        kernel = _select_first_kernel

        def make_in_spec(tb):
            return pl.BlockSpec((tb, span, D), lambda i: (i, 0, 0))

    out_row_bytes = D * itemsize
    tb = _choose_tb(n_full, in_row_bytes, out_row_bytes, sub, block_rows)
    n_blocks = pl.cdiv(n_full, tb)

    vmem_cap = _vmem_capacity_bytes()
    needed = 2 * tb * (in_row_bytes + out_row_bytes)      # double-buffered in+out
    vmem_limit = int(min(vmem_cap // 2, max(needed + (8 << 20), 32 << 20)))

    cost = pl.CostEstimate(
        flops=0,
        transcendentals=0,
        bytes_accessed=int(n_full * in_row_bytes + n_full * out_row_bytes),
    )

    out_main = pl.pallas_call(
        kernel,
        out_shape=jax.ShapeDtypeStruct((n_full, D), x.dtype),
        grid=(n_blocks,),
        in_specs=[make_in_spec(tb)],
        out_specs=pl.BlockSpec((tb, D), lambda i: (i, 0)),
        compiler_params=pltpu.CompilerParams(
            dimension_semantics=("parallel",),
            vmem_limit_bytes=vmem_limit,
        ),
        cost_estimate=cost,
    )(xg)

    if has_tail:
        # Ragged final sampled row handled outside the kernel (one tiny concat).
        out2 = jnp.concatenate([out_main, x2[T_main:T_main + 1]], axis=0)
    else:
        out2 = out_main

    return out2.reshape((T_out,) + feat)


if __name__ == "__main__":
    key = jax.random.PRNGKey(0)
    # Small event tensor: T time steps, C channels, 16x16 spatial -> D = 1024.
    T, C, H, W = 64, 4, 16, 16
    x = jax.random.normal(key, (T, C, H, W), dtype=jnp.float32)

    # span=2: strided-DMA path, multiple grid blocks.
    out = jax.block_until_ready(sampling(x, 2))
    ref = x[::2]
    assert out.shape == ref.shape and out.dtype == ref.dtype
    assert jnp.array_equal(out, ref), "mismatch for span=2"

    # span=3: T % span != 0 -> exercises the out-of-kernel ragged tail.
    out3 = jax.block_until_ready(sampling(x, 3))
    ref3 = x[::3]
    assert out3.shape == ref3.shape
    assert jnp.array_equal(out3, ref3), "mismatch for span=3 (ragged tail)"

    # Forced small block_rows -> multiple pipelined grid steps.
    out_mb = jax.block_until_ready(sampling(x, 2, block_rows=8))
    assert jnp.array_equal(out_mb, ref), "mismatch for multi-block span=2"

    # bf16 (packed dtype) through the strided-DMA path.
    xb = x.astype(jnp.bfloat16)
    outb = jax.block_until_ready(sampling(xb, 2))
    assert jnp.array_equal(outb, xb[::2]), "mismatch for bf16 span=2"

    # Feature width not divisible by 128 -> full-read fallback kernel.
    x_odd = jax.random.normal(jax.random.PRNGKey(0), (30, 3, 5, 7), dtype=jnp.float32)
    out_odd = jax.block_until_ready(sampling(x_odd, 4))
    assert jnp.array_equal(out_odd, x_odd[::4]), "mismatch for fallback (D=105)"

    # span=1 fast path (no copy).
    out1 = jax.block_until_ready(sampling(x, 1))
    assert jnp.array_equal(out1, x), "mismatch for span=1 fast path"

    print("KERNEL_OK")
</pallas_src>

<mosaic_0001>
module attributes {stable_mosaic.version = 11 : i64} {
  func.func @_copy_rows_kernel(%arg0: i32, %arg1: memref<8x1024xf32, #tpu.memory_space<vmem>>, %arg2: memref<8x1024xf32, #tpu.memory_space<vmem>>) attributes {dimension_semantics = [#tpu.dimension_semantics<parallel>], iteration_bounds = array<i64: 4>, scalar_prefetch = 0 : i64, scratch_operands = 0 : i64, tpu.core_type = #tpu.core_type<tc>, window_params = [{transform_indices = @transform_0, window_bounds = array<i64: 8, 1024>}, {transform_indices = @transform_1, window_bounds = array<i64: 8, 1024>}]} {
    %c0 = arith.constant 0 : index
    %c0_0 = arith.constant 0 : index
    %0 = vector.load %arg1[%c0, %c0_0] : memref<8x1024xf32, #tpu.memory_space<vmem>>, vector<8x1024xf32>
    %c0_1 = arith.constant 0 : index
    %c0_2 = arith.constant 0 : index
    %1 = vector.load %arg2[%c0_1, %c0_2] : memref<8x1024xf32, #tpu.memory_space<vmem>>, vector<8x1024xf32>
    tpu.vector_store %arg2[%c0_1, %c0_2], %0 {strides = array<i32>} : memref<8x1024xf32, #tpu.memory_space<vmem>>, vector<8x1024xf32>,
    return
  }
  func.func @transform_0(%arg0: i32) -> (i32, i32) {
    %c0_i32 = arith.constant 0 : i32
    %c0_i32_0 = arith.constant 0 : i32
    return %arg0, %c0_i32 : i32, i32
  }
  func.func @transform_1(%arg0: i32) -> (i32, i32) {
    %c0_i32 = arith.constant 0 : i32
    %c0_i32_0 = arith.constant 0 : i32
    return %arg0, %c0_i32 : i32, i32
  }
}

</mosaic_0001>

<bundles_post_ra>
// kernel: tpu_custom_call.1
= control target key start
LH: loop header
LB: loop body
LE: loop exit
PB: predicated region body
PF: predicated region fallthrough
CT: control target
= control target key end

     0   :  { %6 = vsyncpa [#allocation3], 0  ;;  %s565_s0 = inlined_call_operand.hbm [shape: f32[32,2048], index: 0, kind: input, shape index: {}]   ;;  %s566_s1 = inlined_call_operand.hbm [shape: f32[32,1024], index: 1, kind: output, shape index: {}]  }
   0x1   :  { %8 = vsyncpa [#allocation3 + $0x1], 0 }
   0x2   :  { %9 = vsyncpa [#allocation4], 0 }
   0x3   :  { %11 = vsyncpa [#allocation4 + $0x1], 0  ;;  %s406_s6 = smov 0   ;;  %s408_s7 = smov 0  }
   0x4   :  { %s410_s8 = smov 0   ;;  %s412_s9 = smov 0  }
   0x5 LB: > { %s427_s10 = sadd.s32 4294967295, %s392_s9   ;;  %s234_s11 = sadd.s32 4294967294, %s392_s9   ;;  %s392_s9 = sphi %s412_s9, %s580_s9   ;;  %s388_s8 = sphi %s410_s8, %s579_s8   ;;  %s384_s7 = sphi %s408_s7, %s578_s7   ;;  %s380_s6 = sphi %s406_s6, %s577_s6  }
   0x6   : > { %s431_s12 = sadd.s32 1, %s392_s9   ;;  %s24_s13 = sadd.s32 1, %s388_s8 }
   0x7   : > { %s21_s14 = ssub.s32 %s392_s9, %s431_s12  ;;  %p31_p0 = scmp.ne.s32.totalorder %s388_s8, %s384_s7 }
   0x8   : > { %p22_p1 = scmp.eq.s32.totalorder %s21_s14, 0  ;;  %p32_p2 = scmp.eq.s32.totalorder %s392_s9, 0 }
   0x9   : > { %p37_p3 = scmp.ne.s32.totalorder %s384_s7, %s380_s6  ;;  %p38_p4 = scmp.eq.s32.totalorder %s427_s10, 0 }
   0xa   : > { %s443_s15 = scalar_select %p22_p1, %s388_s8, %s24_s13  }
   0xb   : > { %p445_p5 = por %p32_p2, %p31_p0  ;;  %p449_p6 = por %p38_p4, %p37_p3 }
   0xc   : > { %p61_p7 = scmp.eq.s32.totalorder %s427_s10, 3  ;;  %p67_p8 = scmp.eq.s32.totalorder %s234_s11, 3 }
   0xd   : > { %p262_p9 = scmp.lt.s32.totalorder %s392_s9, 4  ;;  %s87_s20 = sand.u32 1, %s388_s8  }
   0xe   : > { %p455_p10 = por %p61_p7, %p31_p0  ;;  %p459_p11 = por %p67_p8, %p37_p3 }
   0xf   : > { %s248_s21 = sshll.u32 %s392_s9, 11  ;;  %s237_s22 = sshll.u32 %s87_s20, 6 }
  0x10   : > { %s570_s18 = scalar_select %p455_p10, 1, 0 }
  0x11   : > { %s571_s19 = scalar_select %p459_p11, 1, 0 }
  0x12   : > { %s468_s25 = scalar_lea.hbm %s565_s0, %s248_s21  ;;  %s91_s26 = scalar_lea.vmem [#allocation2], %s237_s22 }
  0x13   : > { %s99_s27 = sshll.u32 %s91_s26, 4  ;;  %p472_p12 = pnand %p262_p9, %p445_p5  ;;  %s476_s27 = int_to_ptr.vmem [resolvable:$true] %s99_s27 }
  0x14   : > { %s88_s29 = scalar_lea.sflag [#allocation3], %s87_s20  ;;  %s296_s30 = scalar_lea.hbm %s468_s25, 1024 }
  0x15   : > { %p297_p1 = scmp.ne.s32.totalorder %s468_s25, %s296_s30  ;;  %p298_p2 = pneg %p472_p12 }
  0x16   : > { %s301_s4 = scalar_lea.hbm %s565_s0, 8192  ;;  %p302_p5 = scmp.lt.u32.totalorder %s468_s25, %s565_s0 }
  0x17   : > { %p299_p3 = pnand %p298_p2, %p297_p1  ;;  %p303_p7 = scmp.lt.u32.totalorder %s301_s4, %s296_s30 }
  0x18   : > { %p305_p9 = scmp.lt.u32.totalorder %s296_s30, %s468_s25 }
  0x19   : > { %p300_p4 = pneg %p299_p3  ;;  %p304_p8 = por %p303_p7, %p302_p5 }
  0x1b   : > { %p306_p13 = por %p305_p9, %p304_p8 }
  0x1d   : > { %p307_p0 = pnand %p306_p13, %p300_p4 }
  0x1f   : > { %310 = shalt.err (!%p307_p0)
}
  0x20   : > { %s311_s13 = scalar_lea.vmem %s476_s27, 1024  ;;  %s394_s14 = smov [#allocation2]  }
  0x21   : > { %p312_p1 = scmp.ne.s32.totalorder %s476_s27, %s311_s13  ;;  %s316_s16 = sshll.u32 %s394_s14, 4  ;;  %s317_s16 = int_to_ptr.vmem [resolvable:$false] %s316_s16 }
  0x22   : > { %s318_s20 = scalar_lea.vmem %s317_s16, 2048  ;;  %p319_p10 = scmp.lt.s32.totalorder %s476_s27, %s317_s16 }
  0x23   : > { %p314_p3 = pnand %p312_p1, %p298_p2  ;;  %p320_p5 = scmp.lt.s32.totalorder %s318_s20, %s311_s13 }
  0x25   : > { %p315_p11 = pneg %p314_p3  ;;  %p321_p7 = por %p320_p5, %p319_p10 }
  0x27   : > { %p322_p8 = pnand %p321_p7, %p315_p11 }
  0x29   : > { %325 = shalt.err (!%p322_p8)
}
  0x2a   : > { %257 = dma.hbm_to_vmem [thread:$0]  (!%p472_p12), %s468_s25, 1024, %s476_s27, %s88_s29  }
  0x2b   : > { %p573_p13 = scmp.lt.s32.totalorder %s392_s9, 5  ;;  %p574_p0 = scmp.ge.s32.totalorder %s392_s9, 1 }
  0x2d   : > { %p105_p2 = pnand %p574_p0, %p573_p13 }
  0x2e   : > { %s510_s21 = sand.u32 (!%p105_p2), 1, %s384_s7  }
  0x2f   : > { %108 = sbr.rel (%p105_p2) target bundleno = 81 (0x51), region = 24  ;;  %s241_s22 = sshll.u32 (!%p105_p2), %s510_s21, 6 }
  0x30   : > { %s111_s23 = scalar_lea.sflag (!%p105_p2), [#allocation3], %s510_s21  ;;  %s114_s24 = scalar_lea.vmem (!%p105_p2), [#allocation2], %s241_s22 }
  0x36   : > { %371 = dma.done.wait (%p449_p6), %s111_s23, 1024  }
  0x37   : > { %373 = vsyncadd (%p449_p6), %s111_s23, 4294966272  ;;  %s249_s25 = sshll.u32 %s427_s10, 10  ;;  %s132_s26 = scalar_lea.vmem [#allocation5], %s241_s22  ;;  %v133_v0 = vld [vmem:[%s114_s24] sm:$0xff]  ;;  %v134_v1 = vld [vmem:[%s114_s24 + $0x8] sm:$0xff] }
  0x38   : > { %s164_s27 = sshll.u32 %s132_s26, 4  ;;  %v135_v2 = vld [vmem:[%s114_s24 + $0x10] sm:$0xff]  ;;  %141 = vst [vmem:[%s132_s26] sm:$0xff] %v133_v0  ;;  %142 = vst [vmem:[%s132_s26 + $0x8] sm:$0xff] %v134_v1  ;;  %v136_v3 = vld [vmem:[%s114_s24 + $0x18] sm:$0xff]  ;;  %s522_s17 = scalar_lea.hbm %s566_s1, %s249_s25  ;;  %s524_s27 = int_to_ptr.vmem [resolvable:$true] %s164_s27 }
  0x39   : > { %143 = vst [vmem:[%s132_s26 + $0x10] sm:$0xff] %v135_v2  ;;  %v137_v4 = vld [vmem:[%s114_s24 + $0x20] sm:$0xff]  ;;  %v138_v5 = vld [vmem:[%s114_s24 + $0x28] sm:$0xff]  ;;  %144 = vst [vmem:[%s132_s26 + $0x18] sm:$0xff] %v136_v3  ;;  %s150_s10 = scalar_lea.sflag [#allocation4], %s510_s21  ;;  %s326_s30 = scalar_lea.vmem %s524_s27, 1024 }
  0x3a   : > { %145 = vst [vmem:[%s132_s26 + $0x20] sm:$0xff] %v137_v4  ;;  %146 = vst [vmem:[%s132_s26 + $0x28] sm:$0xff] %v138_v5  ;;  %v139_v6 = vld [vmem:[%s114_s24 + $0x30] sm:$0xff]  ;;  %v140_v7 = vld [vmem:[%s114_s24 + $0x38] sm:$0xff]  ;;  %p327_p6 = scmp.ne.s32.totalorder %s524_s27, %s326_s30  ;;  %p575_p10 = scmp.ne.s32.totalorder %s570_s18, 0 }
  0x3b   : > { %147 = vst [vmem:[%s132_s26 + $0x30] sm:$0xff] %v139_v6  ;;  %148 = vst [vmem:[%s132_s26 + $0x38] sm:$0xff] %v140_v7  ;;  %s395_s2 = smov [#allocation5]  }
  0x3c   : > { %p328_p11 = pnand %p327_p6, %p575_p10  ;;  %s330_s3 = sshll.u32 %s395_s2, 4  ;;  %s331_s3 = int_to_ptr.vmem [resolvable:$false] %s330_s3 }
  0x3d   : > { %s332_s4 = scalar_lea.vmem %s331_s3, 2048  ;;  %p333_p4 = scmp.lt.s32.totalorder %s524_s27, %s331_s3 }
  0x3e   : > { %p329_p12 = pneg %p328_p11  ;;  %p334_p9 = scmp.lt.s32.totalorder %s332_s4, %s326_s30 }
  0x40   : > { %p335_p1 = por %p334_p9, %p333_p4 }
  0x42   : > { %p336_p3 = pnand %p335_p1, %p329_p12 }
  0x44   : > { %339 = shalt.err (!%p336_p3)
}
  0x45   : > { %s340_s5 = scalar_lea.hbm %s522_s17, 1024  ;;  %s344_s14 = scalar_lea.hbm %s566_s1, 4096 }
  0x46   : > { %p341_p5 = scmp.ne.s32.totalorder %s522_s17, %s340_s5  ;;  %p345_p13 = scmp.lt.u32.totalorder %s522_s17, %s566_s1 }
  0x47   : > { %p346_p0 = scmp.lt.u32.totalorder %s344_s14, %s340_s5  ;;  %p348_p6 = scmp.lt.u32.totalorder %s340_s5, %s522_s17 }
  0x48   : > { %p342_p7 = pnand %p341_p5, %p575_p10 }
  0x49   : > { %p347_p2 = por %p346_p0, %p345_p13 }
  0x4a   : > { %p343_p8 = pneg %p342_p7 }
  0x4b   : > { %p349_p11 = por %p348_p6, %p347_p2 }
  0x4d   : > { %p350_p12 = pnand %p349_p11, %p343_p8 }
  0x4f   : > { %353 = shalt.err (!%p350_p12)
}
  0x50   : > { %252 = dma.vmem_to_hbm [thread:$0]  (%p575_p10), %s524_s27, 1024, %s522_s17, %s150_s10  }
  0x51 PF: > { %p263_p4 = scmp.ge.s32.totalorder %s392_s9, 2  ;;  %s176_s21 = sand.u32 1, %s380_s6  }
  0x52   : > { %p576_p9 = scmp.ne.s32.totalorder %s571_s19, 0  ;;  %s177_s22 = scalar_lea.sflag [#allocation4], %s176_s21 }
  0x54   : > { %p259_p1 = pnand %p263_p4, %p576_p9 }
  0x56   : > { %375 = dma.done.wait (!%p259_p1), %s177_s22, 1024  }
  0x57   : > { %377 = vsyncadd (!%p259_p1), %s177_s22, 4294966272  ;;  %p14_p3 = scmp.ge.s32.totalorder %s431_s12, 6   ;;  %s577_s6 = smov %s384_s7 }
  0x58   : > { %s578_s7 = smov %s388_s8  ;;  %s579_s8 = smov %s443_s15 }
  0x59   : > { %s580_s9 = smov %s431_s12  ;;  %16 = sbr.rel (!%p14_p3) target bundleno = 5 (0x5), region = 69 }
  0x60   :  { %182 = vsyncpa [#allocation3], 1 }
  0x61   :  { %184 = vsyncpa [#allocation3 + $0x1], 1 }
  0x62   :  { %185 = vsyncpa [#allocation4], 1 }
  0x63   :  { %187 = vsyncpa [#allocation4 + $0x1], 1 }

</bundles_post_ra>
